<compile_context>
chip_gen: v7x
topology: tpu7x:2x2x1
jax: 0.10.0
libtpu: 0.0.40
codegen_flags: <defaults>
</compile_context>

<pallas_src>
import jax
import jax.numpy as jnp
from jax.experimental import pallas as pl
from jax.experimental.pallas import tpu as pltpu


def _self_attention_kernel(x_ref, wqkv_ref, bqkv_ref, o_ref):
    bb, S, D = x_ref.shape

    # Layout-preserving flatten (minor dim D unchanged) -> one tall MXU matmul.
    x2 = x_ref[...].reshape(bb * S, D)          # (bb*S, D), bf16
    w = wqkv_ref[...]                           # (D, 3D), bf16, Q part pre-scaled
    b = bqkv_ref[...]                           # (1, 3D), f32

    # Fused Q/K/V projection, f32 accumulation.
    qkv = jnp.dot(x2, w, preferred_element_type=jnp.float32) + b   # (bb*S, 3D)
    qkv = qkv.reshape(bb, S, 3 * D)             # layout-preserving (minor dim 3D)

    q = qkv[..., 0 * D:1 * D]                   # already scaled by 1/sqrt(D)
    k = qkv[..., 1 * D:2 * D]
    v = qkv[..., 2 * D:3 * D]

    # scores = q @ k^T without materializing a transpose (scale folded into W_q).
    scores = jnp.einsum('bqd,bkd->bqk', q, k,
                        preferred_element_type=jnp.float32)        # (bb, S, S)

    # Numerically-stable softmax over the key axis (dim=2 in the module), f32.
    m = jnp.max(scores, axis=-1, keepdims=True)
    e = jnp.exp(scores - m)
    attn = e / jnp.sum(e, axis=-1, keepdims=True)                  # exact divide

    weighted = jnp.einsum('bqk,bkd->bqd', attn, v,
                          preferred_element_type=jnp.float32)      # (bb, S, D)

    # (bb, S, D) -> (bb*S, D) keeps D as the minor dim: free, no XLU relayout.
    o_ref[...] = weighted.reshape(bb * S, D).astype(o_ref.dtype)

    # TODO(synk): if compute (not HBM) ever binds, pack G batches per (128,128)
    # scores tile with a block-diagonal segment mask to fill VPU/EUP lanes.


def prepare_params(wq, bq, wk, bk, wv, bv, *, param_dtype=jnp.bfloat16):
    """One-time parameter prep: fuse Q|K|V, pre-transpose (out,in)->(in,out),
    fold 1/sqrt(D) into the Q projection, cast weights to the MXU dtype."""
    D = wq.shape[0]
    scale = 1.0 / (float(D) ** 0.5)
    w_qkv = jnp.concatenate([wq.T * scale, wk.T, wv.T], axis=1).astype(param_dtype)
    b_qkv = jnp.concatenate([bq * scale, bk, bv]).reshape(1, 3 * D).astype(jnp.float32)
    return w_qkv, b_qkv


def _pick_block_batch(B, cap=256):
    """Largest divisor of B that is <= cap; single grid step if B <= cap.
    cap=256 keeps per-step intermediates well inside v7x's VMEM while giving
    >= 3-4 grid steps per core for large B (DMA/compute overlap)."""
    if B <= cap:
        return B
    for bb in range(cap, 0, -1):
        if B % bb == 0:
            return bb
    return 1


def self_attention_fused(x, w_qkv, b_qkv, *, block_batch=None,
                         compute_dtype=jnp.bfloat16):
    """x: (B, S, D); w_qkv: (D, 3D) (Q pre-scaled); b_qkv: (1, 3D). -> (B, S*D)."""
    B, S, D = x.shape
    assert w_qkv.shape == (D, 3 * D) and b_qkv.shape == (1, 3 * D)

    bb = _pick_block_batch(B) if block_batch is None else block_batch
    assert B % bb == 0
    num_steps = B // bb

    x_c = x.astype(compute_dtype)   # halve input HBM traffic; matmuls accumulate f32

    out = pl.pallas_call(
        _self_attention_kernel,
        out_shape=jax.ShapeDtypeStruct((B * S, D), x.dtype),
        grid_spec=pltpu.PrefetchScalarGridSpec(
            num_scalar_prefetch=0,
            grid=(num_steps,),
            in_specs=[
                pl.BlockSpec((bb, S, D), lambda i: (i, 0, 0)),     # x block
                pl.BlockSpec((D, 3 * D), lambda i: (0, 0)),        # fused W (resident)
                pl.BlockSpec((1, 3 * D), lambda i: (0, 0)),        # fused b (resident)
            ],
            out_specs=pl.BlockSpec((bb * S, D), lambda i: (i, 0)),
        ),
        compiler_params=pltpu.CompilerParams(
            dimension_semantics=("parallel",),
            vmem_limit_bytes=32 * 1024 * 1024,   # safe on v5e/v6e/v7x
        ),
    )(x_c, w_qkv, b_qkv)

    # (B*S, D) -> (B, S*D): contiguous view of the HBM result, free in the wrapper.
    return out.reshape(B, S * D)


def self_attention(x, wq, bq, wk, bk, wv, bv):
    """Convenience wrapper: PyTorch-layout params -> forward pass."""
    w_qkv, b_qkv = prepare_params(wq, bq, wk, bk, wv, bv)
    return self_attention_fused(x, w_qkv, b_qkv)


def _reference(x, wq, bq, wk, bk, wv, bv):
    """Pure-JAX reference matching the PyTorch module."""
    q = x @ wq.T + bq
    k = x @ wk.T + bk
    v = x @ wv.T + bv
    scores = jnp.einsum('bqd,bkd->bqk', q, k) / (x.shape[-1] ** 0.5)
    attn = jax.nn.softmax(scores, axis=-1)
    weighted = jnp.einsum('bqk,bkd->bqd', attn, v)
    return weighted.reshape(x.shape[0], -1)


if __name__ == "__main__":
    # Small shapes consistent with the module: input_dim=32, sequence_length=8.
    B, S, D = 2, 8, 32

    key = jax.random.PRNGKey(0)
    kx, kq, kbq, kk, kbk, kv, kbv = jax.random.split(key, 7)

    x = jax.random.normal(kx, (B, S, D), dtype=jnp.float32)

    # Deterministic parameter init (nn.Linear-style uniform bound).
    bound = 1.0 / (D ** 0.5)
    wq = jax.random.uniform(kq, (D, D), jnp.float32, -bound, bound)
    bq = jax.random.uniform(kbq, (D,), jnp.float32, -bound, bound)
    wk = jax.random.uniform(kk, (D, D), jnp.float32, -bound, bound)
    bk = jax.random.uniform(kbk, (D,), jnp.float32, -bound, bound)
    wv = jax.random.uniform(kv, (D, D), jnp.float32, -bound, bound)
    bv = jax.random.uniform(kbv, (D,), jnp.float32, -bound, bound)

    # Params are prepared once (would be done at parameter-prep time in practice).
    w_qkv, b_qkv = prepare_params(wq, bq, wk, bk, wv, bv)
    out = self_attention_fused(x, w_qkv, b_qkv)
    jax.block_until_ready(out)
    assert out.shape == (B, S * D)

    ref = _reference(x, wq, bq, wk, bk, wv, bv)
    # bf16 operands on the projection -> small (<1e-2) deviation allowed.
    assert jnp.allclose(out, ref, atol=3e-2, rtol=3e-2)

    print("KERNEL_OK")
</pallas_src>

<mosaic_0001>
module attributes {stable_mosaic.version = 11 : i64} {
  func.func @_self_attention_kernel(%arg0: i32, %arg1: memref<2x8x32xbf16, #tpu.memory_space<vmem>>, %arg2: memref<32x96xbf16, #tpu.memory_space<vmem>>, %arg3: memref<1x96xf32, #tpu.memory_space<vmem>>, %arg4: memref<16x32xf32, #tpu.memory_space<vmem>>) attributes {dimension_semantics = [#tpu.dimension_semantics<parallel>], iteration_bounds = array<i64: 1>, scalar_prefetch = 0 : i64, scratch_operands = 0 : i64, tpu.core_type = #tpu.core_type<tc>, window_params = [{transform_indices = @transform_0, window_bounds = array<i64: 2, 8, 32>}, {pipeline_mode = #tpu.pipeline_mode<synchronous>, transform_indices = @transform_1, window_bounds = array<i64: 32, 96>}, {pipeline_mode = #tpu.pipeline_mode<synchronous>, transform_indices = @transform_2, window_bounds = array<i64: 1, 96>}, {transform_indices = @transform_3, window_bounds = array<i64: 16, 32>}]} {
    %c0 = arith.constant 0 : index
    %c0_0 = arith.constant 0 : index
    %c0_1 = arith.constant 0 : index
    %0 = vector.load %arg1[%c0, %c0_0, %c0_1] : memref<2x8x32xbf16, #tpu.memory_space<vmem>>, vector<2x8x32xbf16>
    %1 = vector.shape_cast %0 : vector<2x8x32xbf16> to vector<16x32xbf16>
    %c0_2 = arith.constant 0 : index
    %c0_3 = arith.constant 0 : index
    %2 = vector.load %arg2[%c0_2, %c0_3] : memref<32x96xbf16, #tpu.memory_space<vmem>>, vector<32x96xbf16>
    %c0_4 = arith.constant 0 : index
    %c0_5 = arith.constant 0 : index
    %3 = vector.load %arg3[%c0_4, %c0_5] : memref<1x96xf32, #tpu.memory_space<vmem>>, vector<1x96xf32>
    %cst = arith.constant dense<0.000000e+00> : vector<16x96xf32>
    %4 = tpu.matmul %1, %2, %cst {dimension_numbers = #tpu.dot_dimension_numbers<[1], [0], [0], [1], [0, 0, 1, 1], [], []>} : vector<16x32xbf16>, vector<32x96xbf16>, vector<16x96xf32> -> vector<16x96xf32>
    %5 = vector.broadcast %3 : vector<1x96xf32> to vector<16x96xf32>
    %6 = arith.addf %4, %5 : vector<16x96xf32>
    %7 = vector.shape_cast %6 : vector<16x96xf32> to vector<2x8x96xf32>
    %8 = vector.extract_strided_slice %7 {offsets = [0, 0, 0], sizes = [2, 8, 32], strides = [1, 1, 1]} : vector<2x8x96xf32> to vector<2x8x32xf32>
    %9 = vector.extract_strided_slice %7 {offsets = [0, 0, 32], sizes = [2, 8, 32], strides = [1, 1, 1]} : vector<2x8x96xf32> to vector<2x8x32xf32>
    %10 = vector.extract_strided_slice %7 {offsets = [0, 0, 64], sizes = [2, 8, 32], strides = [1, 1, 1]} : vector<2x8x96xf32> to vector<2x8x32xf32>
    "tpu.trace_start"() <{level = 10 : i32, message = "bqd,bkd->bqk"}> : () -> ()
    %cst_6 = arith.constant dense<0.000000e+00> : vector<2x8x8xf32>
    %11 = tpu.matmul %8, %9, %cst_6 {dimension_numbers = #tpu.dot_dimension_numbers<[2], [2], [1], [1], [0, 0, 0, 1, 1, 1], [0], [0]>} : vector<2x8x32xf32>, vector<2x8x32xf32>, vector<2x8x8xf32> -> vector<2x8x8xf32>
    "tpu.trace_stop"() : () -> ()
    %cst_7 = arith.constant dense<0xFF800000> : vector<2x8xf32>
    %12 = vector.multi_reduction <maximumf>, %11, %cst_7 [2] : vector<2x8x8xf32> to vector<2x8xf32>
    %13 = vector.shape_cast %12 : vector<2x8xf32> to vector<2x8x1xf32>
    %14 = vector.broadcast %13 : vector<2x8x1xf32> to vector<2x8x8xf32>
    %15 = arith.subf %11, %14 : vector<2x8x8xf32>
    %16 = math.exp %15 : vector<2x8x8xf32>
    %cst_8 = arith.constant dense<0.000000e+00> : vector<2x8xf32>
    %17 = vector.multi_reduction <add>, %16, %cst_8 [2] : vector<2x8x8xf32> to vector<2x8xf32>
    %18 = vector.shape_cast %17 : vector<2x8xf32> to vector<2x8x1xf32>
    %19 = vector.broadcast %18 : vector<2x8x1xf32> to vector<2x8x8xf32>
    %20 = arith.divf %16, %19 : vector<2x8x8xf32>
    "tpu.trace_start"() <{level = 10 : i32, message = "bqk,bkd->bqd"}> : () -> ()
    %cst_9 = arith.constant dense<0.000000e+00> : vector<2x8x32xf32>
    %21 = tpu.matmul %20, %10, %cst_9 {dimension_numbers = #tpu.dot_dimension_numbers<[2], [1], [1], [2], [0, 0, 0, 1, 1, 2], [0], [0]>} : vector<2x8x8xf32>, vector<2x8x32xf32>, vector<2x8x32xf32> -> vector<2x8x32xf32>
    "tpu.trace_stop"() : () -> ()
    %22 = vector.shape_cast %21 : vector<2x8x32xf32> to vector<16x32xf32>
    %c0_10 = arith.constant 0 : index
    %c0_11 = arith.constant 0 : index
    %23 = vector.load %arg4[%c0_10, %c0_11] : memref<16x32xf32, #tpu.memory_space<vmem>>, vector<16x32xf32>
    tpu.vector_store %arg4[%c0_10, %c0_11], %22 {strides = array<i32>} : memref<16x32xf32, #tpu.memory_space<vmem>>, vector<16x32xf32>,
    return
  }
  func.func @transform_0(%arg0: i32) -> (i32, i32, i32) {
    %c0_i32 = arith.constant 0 : i32
    %c0_i32_0 = arith.constant 0 : i32
    %c0_i32_1 = arith.constant 0 : i32
    return %arg0, %c0_i32, %c0_i32_0 : i32, i32, i32
  }
  func.func @transform_1(%arg0: i32) -> (i32, i32) {
    %c0_i32 = arith.constant 0 : i32
    %c0_i32_0 = arith.constant 0 : i32
    %c0_i32_1 = arith.constant 0 : i32
    return %c0_i32, %c0_i32_0 : i32, i32
  }
  func.func @transform_2(%arg0: i32) -> (i32, i32) {
    %c0_i32 = arith.constant 0 : i32
    %c0_i32_0 = arith.constant 0 : i32
    %c0_i32_1 = arith.constant 0 : i32
    return %c0_i32, %c0_i32_0 : i32, i32
  }
  func.func @transform_3(%arg0: i32) -> (i32, i32) {
    %c0_i32 = arith.constant 0 : i32
    %c0_i32_0 = arith.constant 0 : i32
    return %arg0, %c0_i32 : i32, i32
  }
}

</mosaic_0001>

<bundles_post_ra>
// kernel: tpu_custom_call.1
= control target key start
LH: loop header
LB: loop body
LE: loop exit
PB: predicated region body
PF: predicated region fallthrough
CT: control target
= control target key end

     0   :  { %8 = vsyncpa [#allocation3], 0  ;;  %s704_s0 = inlined_call_operand.hbm [shape: bf16[2,8,32], index: 0, kind: input, shape index: {}]   ;;  %s705_s1 = inlined_call_operand.hbm [shape: bf16[32,96], index: 1, kind: input, shape index: {}]   ;;  %s706_s2 = inlined_call_operand.vmem [shape: f32[1,96], index: 2, kind: input, shape index: {}]   ;;  %s707_s3 = inlined_call_operand.hbm [shape: f32[16,32], index: 3, kind: output, shape index: {}]  }
   0x1   :  { %9 = vsyncpa [#allocation6], 0 }
   0x2   :  { %10 = vsyncpa [#allocation4], 0  ;;  %s611_s12 = smov [#allocation2]   ;;  %s539_s16 = scalar_lea.hbm %s704_s0, 128 }
   0x3   :  { %s16_s13 = sshll.u32 %s611_s12, 4  ;;  %p540_p0 = scmp.ne.s32.totalorder %s704_s0, %s539_s16  ;;  %s17_s13 = int_to_ptr.vmem [resolvable:$true] %s16_s13 }
   0x4   :  { %p543_p1 = scmp.lt.u32.totalorder %s539_s16, %s704_s0 }
   0x6   :  { %p545_p2 = pnand %p543_p1, %p540_p0 }
   0x8   :  { %548 = shalt.err (!%p545_p2)
}
   0x9   :  { %s549_s21 = scalar_lea.vmem %s17_s13, 128  ;;  %p554_p4 = scmp.lt.s32.totalorder %s17_s13, %s17_s13 }
   0xa   :  { %p550_p3 = scmp.ne.s32.totalorder %s17_s13, %s549_s21  ;;  %p555_p5 = scmp.lt.s32.totalorder %s549_s21, %s549_s21 }
   0xc   :  { %p556_p6 = por %p555_p5, %p554_p4 }
   0xe   :  { %p557_p7 = pnand %p556_p6, %p550_p3 }
  0x10   :  { %560 = shalt.err (!%p557_p7)
}
  0x11   :  { %s612_s22 = smov 64   ;;  %s613_s23 = smov 4  }
  0x12   :  { %22 = dma.hbm_to_vmem [thread:$0]  %s704_s0, 128, %s17_s13, [#allocation3], %s612_s22, %s612_s22, %s613_s23  }
  0x13   :  { %s614_s26 = smov [#allocation5]   ;;  %s561_s30 = scalar_lea.hbm %s705_s1, 256 }
  0x14   :  { %s28_s27 = sshll.u32 %s614_s26, 4  ;;  %p562_p8 = scmp.ne.s32.totalorder %s705_s1, %s561_s30  ;;  %s29_s27 = int_to_ptr.vmem [resolvable:$true] %s28_s27 }
  0x15   :  { %p565_p9 = scmp.lt.u32.totalorder %s561_s30, %s705_s1 }
  0x17   :  { %p567_p10 = pnand %p565_p9, %p562_p8 }
  0x19   :  { %570 = shalt.err (!%p567_p10)
}
  0x1a   :  { %s571_s8 = scalar_lea.vmem %s29_s27, 256  ;;  %p576_p12 = scmp.lt.s32.totalorder %s29_s27, %s29_s27 }
  0x1b   :  { %p572_p11 = scmp.ne.s32.totalorder %s29_s27, %s571_s8  ;;  %p577_p13 = scmp.lt.s32.totalorder %s571_s8, %s571_s8 }
  0x1d   :  { %p578_p0 = por %p577_p13, %p576_p12 }
  0x1f   :  { %p579_p1 = pnand %p578_p0, %p572_p11 }
  0x21   :  { %582 = shalt.err (!%p579_p1)
}
  0x22   :  { %34 = dma.hbm_to_vmem [thread:$0]  %s705_s1, 256, %s29_s27, [#allocation6], %s612_s22, %s612_s22, %s613_s23  }
  0x23   :  { %605 = dma.done.wait [#allocation3], 128  }
  0x24   :  { %606 = vsyncadd [#allocation3], 4294967168 }
  0x25   :  { %607 = dma.done.wait [#allocation6], 256  }
  0x26   :  { %608 = vsyncadd [#allocation6], 4294967040  ;;  %v615_v0 = vmov 0.0   ;;  %vm616_vm0 = vmmov 0   ;;  %v528_v1 = vld [vmem:[#allocation5] sm:$0xff]   ;;  %v529_v2 = vld [vmem:[#allocation5 + $0x8] sm:$0xff]  }
  0x27   :  { %490 = vmatprep.subr.bf16.mxu0 %v615_v0  ;;  %494 = vmatprep.mubr.msk.bf16.mxu0 %vm616_vm0, %v615_v0  ;;  %v530_v3 = vld [vmem:[#allocation2] sm:$0xff]   ;;  %vm74_vm1 = vcmask 261120   ;;  %s617_s11 = smov 96   ;;  %vm273_vm2 = vcmask 64512  }
  0x28   :  { %498 = vmatprep.subr.mxu1 %v615_v0  ;;  %500 = vmatprep.mubr.msk.f32.mxu1 %vm616_vm0, %v615_v0  ;;  %v468_v4 = vld [vmem:[%s706_s2] ss:$0 sm:$0xff]  ;;  %s618_s2 = smov [#allocation7]  }
  0x29   :  { %491 = vmatpush3.bf16.msra.mxu0 %v528_v1  ;;  %s455_s12 = sshll.u32 %s618_s2, 4  ;;  %s456_s12 = int_to_ptr.vmem [resolvable:$true] %s455_s12 }
  0x2a   :  { %492 = vmatprep.subr.bf16.mxu0 %v615_v0  ;;  %s583_s13 = scalar_lea.vmem %s456_s12, 256  ;;  %p588_p3 = scmp.lt.s32.totalorder %s456_s12, %s456_s12 }
  0x2b   :  { %p584_p2 = scmp.ne.s32.totalorder %s456_s12, %s583_s13  ;;  %p589_p4 = scmp.lt.s32.totalorder %s583_s13, %s583_s13 }
  0x2d   :  { %493 = vmatpush3.bf16.msra.mxu0 %v529_v2  ;;  %p590_p5 = por %p589_p4, %p588_p3 }
  0x2e   :  { %513 = vmatprep.subr.mxu0 %v615_v0 }
  0x2f   :  { %p591_p6 = pnand %p590_p5, %p584_p2 }
  0x30   :  { %495 = vmatmul.mubr.msk.bf16.vlgmr.msra.gmra.mrb[0].mxu0 %vm74_vm1, %v530_v3 }
  0x31   :  { %515 = vmatprep.mubr.msk.f32.mxu0 %vm616_vm0, %v615_v0 }
 0x103   :  { %v112_v5 = vpop.f32.mrb[0].mxu0 }
 0x104   :  { %v113_v6 = vadd.f32 %v468_v4, %v112_v5  ;;  %v496_v7 = vpop.f32.mrb[1].mxu0 }
 0x105   :  { %v115_v8 = vpop.f32.mrb[2].mxu0 }
 0x106   :  { %120 = vrot.lane.b32.xlu0 %v113_v6, %s617_s11  ;;  %v497_v9 = vpop.f32.mrb[3].mxu0  ;;  %v116_v10 = vadd.f32 %v468_v4, %v115_v8 }
 0x10a   :  { %197 = vrot.lane.b32.xlu0 %v116_v10, %s617_s11 }
 0x178   :  { %v121_v11 = vpop.permute.xlu0 %120 }
 0x179   :  { %499 = vmatpush3.xpose.msk.msra.mxu1 %vm74_vm1, %v121_v11 }
 0x17a   :  { %503 = vmatprep.subr.mxu1 %v615_v0 }
 0x17c   :  { %501 = vmatmul.mubr.msk.f32.vlgmr.msra.gmra.mrb[0].mxu1 %vm74_vm1, %v113_v6  ;;  %v198_v12 = vpop.permute.xlu0 %197 }
 0x17d   :  { %504 = vmatpush3.xpose.msk.msra.mxu1 %vm74_vm1, %v198_v12  ;;  %505 = vmatprep.mubr.msk.f32.mxu1 %vm616_vm0, %v615_v0 }
 0x17e   :  { %508 = vmatprep.subr.mxu1 %v615_v0 }
 0x180   :  { %506 = vmatmul.mubr.msk.f32.vlgmr.msra.gmra.mrb[2].mxu1 %vm74_vm1, %v116_v10 }
 0x181   :  { %510 = vmatprep.mubr.msk.f32.mxu1 %vm616_vm0, %v615_v0 }
 0x24f   :  { %v192_v13 = vpop.f32.mrb[0].mxu1 }
 0x250   :  { %v502_v14 = vpop.f32.mrb[1].mxu1  ;;  %v274_v15 = vsel %vm273_vm2, %v192_v13, -inf }
 0x251   :  { %275 = vmax.xlane.f32.xlu1 %v274_v15 }
 0x253   :  { %v269_v16 = vpop.f32.mrb[2].mxu1 }
 0x254   :  { %v507_v17 = vpop.f32.mrb[3].mxu1  ;;  %v277_v18 = vsel %vm273_vm2, %v269_v16, -inf }
 0x255   :  { %278 = vmax.xlane.f32.xlu1 %v277_v18 }
 0x266   :  { %296 = vrot.lane.b32.xlu1 %v113_v6, %s612_s22 }
 0x2de   :  { %v276_v19 = vpop.xlane.xlu1 %275 }
 0x2df   :  { %v280_v20 = vsub.f32 %v192_v13, %v276_v19 }
 0x2e1   :  { %v282_v21 = vmul.f32 1.442695, %v280_v20 }
 0x2e2   :  { %v279_v22 = vpop.xlane.xlu1 %278 }
 0x2e3   :  { %531 = vpow2.f32 %v282_v21  ;;  %v281_v23 = vsub.f32 %v269_v16, %v279_v22 }
 0x2e5   :  { %v284_v24 = vmul.f32 1.442695, %v281_v23 }
 0x2e6   :  { %v297_v25 = vpop.permute.xlu1 %296 }
 0x2e7   :  { %533 = vpow2.f32 %v284_v24  ;;  %509 = vmatpush3.msra.mxu1 %v297_v25 }
 0x2ed   :  { %v532_v26 = vpop.eup %531 }
 0x2ee   :  { %v286_v27 = vsel %vm273_vm2, %v532_v26, 0.0 }
 0x2ef   :  { %287 = vadd.xlane.f32.xlu0 %v286_v27 }
 0x2f1   :  { %v534_v28 = vpop.eup %533 }
 0x2f2   :  { %v289_v29 = vsel %vm273_vm2, %v534_v28, 0.0 }
 0x2f3   :  { %290 = vadd.xlane.f32.xlu1 %v289_v29 }
 0x304   :  { %372 = vrot.lane.b32.xlu1 %v116_v10, %s612_s22 }
 0x37c   :  { %v288_v30 = vpop.xlane.xlu0 %287 }
 0x37d   :  { %535 = vrcp.f32 %v288_v30 }
 0x380   :  { %v291_v31 = vpop.xlane.xlu1 %290 }
 0x381   :  { %537 = vrcp.f32 %v291_v31 }
 0x384   :  { %v373_v32 = vpop.permute.xlu1 %372 }
 0x385   :  { %514 = vmatpush3.msra.mxu0 %v373_v32 }
 0x387   :  { %v536_v33 = vpop.eup %535 }
 0x388   :  { %v293_v34 = vmul.f32 %v536_v33, %v532_v26 }
 0x38a   :  { %511 = vmatmul.mubr.msk.f32.vlgmr.msra.gmra.mrb[4].mxu1 %vm273_vm2, %v293_v34 }
 0x38b   :  { %v538_v35 = vpop.eup %537 }
 0x38c   :  { %v295_v36 = vmul.f32 %v538_v35, %v534_v28 }
 0x38e   :  { %516 = vmatmul.mubr.msk.f32.vlgmr.msra.gmra.mrb[4].mxu0 %vm273_vm2, %v295_v36 }
 0x45d   :  { %v368_v37 = vpop.f32.mrb[4].mxu1 }
 0x45e   :  { %448 = vst.msk [vmem:[#allocation7] sm:$0xff] %vm74_vm1, %v368_v37  ;;  %v512_v38 = vpop.f32.mrb[5].mxu1 }
 0x461   :  { %v444_v39 = vpop.f32.mrb[4].mxu0 }
 0x462   :  { %449 = vst.msk [vmem:[#allocation7 + $0x8] sm:$0xff] %vm74_vm1, %v444_v39  ;;  %v517_v40 = vpop.f32.mrb[5].mxu0 }
 0x463   :  { %594 = shalt.err (!%p591_p6)
}
 0x464   :  { %s595_s16 = scalar_lea.hbm %s707_s3, 256 }
 0x465   :  { %p596_p7 = scmp.ne.s32.totalorder %s707_s3, %s595_s16  ;;  %p599_p8 = scmp.lt.u32.totalorder %s595_s16, %s707_s3 }
 0x467   :  { %p601_p9 = pnand %p599_p8, %p596_p7 }
 0x469   :  { %604 = shalt.err (!%p601_p9)
}
 0x46a   :  { %s619_s21 = smov 128   ;;  %s620_s22 = smov 8  }
 0x46b   :  { %461 = dma.vmem_to_hbm [thread:$0]  %s456_s12, 256, %s707_s3, [#allocation4], %s619_s21, %s619_s21, %s620_s22  }
 0x46c   :  { %609 = dma.done.wait [#allocation4], 256  }
 0x46d   :  { %610 = vsyncadd [#allocation4], 4294967040 }
 0x46e   :  { %465 = vsyncpa [#allocation3], 1 }
 0x46f   :  { %466 = vsyncpa [#allocation6], 1 }
 0x470   :  { %467 = vsyncpa [#allocation4], 1 }

</bundles_post_ra>
